<compile_context>
chip_gen: v6e
topology: v6e:2x2x1
jax: 0.10.0
libtpu: 0.0.40
codegen_flags: <defaults>
</compile_context>

<pallas_src>
import jax
import jax.numpy as jnp
from jax import lax
from jax.experimental import pallas as pl
from jax.experimental.pallas import tpu as pltpu

LANE = 128


def _round_up(v, m):
    return ((v + m - 1) // m) * m


# ---------------------------------------------------------------------------
# Stage 1: node -> edge.   e = PReLU( de_inv * (H^T @ (x @ W_n2e)) )
# grid = (E/tE, N/tK); reduction over node tiles (axis 1, "arbitrary").
# ---------------------------------------------------------------------------
def _node_to_edge_kernel(h_ref, x_ref, w1_ref, de_inv_ref, alpha_ref,
                         e_ref, acc_ref):
    k = pl.program_id(1)

    @pl.when(k == 0)
    def _():
        acc_ref[...] = jnp.zeros_like(acc_ref)

    # (tK, F_in) bf16 @ (F_in, F_e) bf16 -> f32, cast back to bf16 for the MXU.
    xw = jnp.dot(x_ref[...], w1_ref[...],
                 preferred_element_type=jnp.float32).astype(jnp.bfloat16)
    # Contract over H's row (node) dim: (tK, tE)^T @ (tK, F_e) -> (tE, F_e).
    acc_ref[...] += lax.dot_general(
        h_ref[...], xw,
        dimension_numbers=(((0,), (0,)), ((), ())),
        preferred_element_type=jnp.float32)

    @pl.when(k == pl.num_programs(1) - 1)
    def _():
        a = alpha_ref[0]                                  # PReLU slope (SMEM)
        e = de_inv_ref[...] * acc_ref[...]                # row_norm, f32
        e_ref[...] = jnp.where(e >= 0, e, a * e)          # PReLU inside conv


def node_to_edge(H, x, w1, de_inv, alpha, *, tile_e=LANE, tile_k=LANE):
    n_pad, e_pad = H.shape
    f_in = x.shape[1]
    f_e = w1.shape[1]
    grid = (e_pad // tile_e, n_pad // tile_k)
    return pl.pallas_call(
        _node_to_edge_kernel,
        out_shape=jax.ShapeDtypeStruct((e_pad, f_e), jnp.float32),
        grid=grid,
        in_specs=[
            pl.BlockSpec((tile_k, tile_e), lambda i, k: (k, i)),   # H
            pl.BlockSpec((tile_k, f_in), lambda i, k: (k, 0)),     # x
            pl.BlockSpec((f_in, f_e), lambda i, k: (0, 0)),        # W_n2e
            pl.BlockSpec((tile_e, 1), lambda i, k: (i, 0)),        # 1/De
            pl.BlockSpec(memory_space=pltpu.MemorySpace.SMEM),     # PReLU slope
        ],
        out_specs=pl.BlockSpec((tile_e, f_e), lambda i, k: (i, 0)),
        scratch_shapes=[pltpu.VMEM((tile_e, f_e), jnp.float32)],
        compiler_params=pltpu.CompilerParams(
            dimension_semantics=("parallel", "arbitrary")),
    )(H, x, w1, de_inv, alpha)


# ---------------------------------------------------------------------------
# Stage 2: edge -> node.   n = PReLU( dn_inv * (H @ (e @ W_e2n)) )
# (the trailing PReLU is the HyperEncoder-level `self.act(x)`, fused in)
# grid = (N/tN, E/tK); reduction over edge tiles (axis 1, "arbitrary").
# ---------------------------------------------------------------------------
def _edge_to_node_kernel(h_ref, e_ref, w2_ref, dn_inv_ref, alpha_ref,
                         n_ref, acc_ref):
    k = pl.program_id(1)

    @pl.when(k == 0)
    def _():
        acc_ref[...] = jnp.zeros_like(acc_ref)

    ew = jnp.dot(e_ref[...], w2_ref[...],
                 preferred_element_type=jnp.float32).astype(jnp.bfloat16)
    acc_ref[...] += jnp.dot(h_ref[...], ew,
                            preferred_element_type=jnp.float32)

    @pl.when(k == pl.num_programs(1) - 1)
    def _():
        a = alpha_ref[0]
        n = dn_inv_ref[...] * acc_ref[...]
        n_ref[...] = jnp.where(n >= 0, n, a * n)


def edge_to_node(H, e, w2, dn_inv, alpha, *, tile_n=LANE, tile_k=LANE):
    n_pad, e_pad = H.shape
    f_e = e.shape[1]
    f_n = w2.shape[1]
    grid = (n_pad // tile_n, e_pad // tile_k)
    return pl.pallas_call(
        _edge_to_node_kernel,
        out_shape=jax.ShapeDtypeStruct((n_pad, f_n), jnp.float32),
        grid=grid,
        in_specs=[
            pl.BlockSpec((tile_n, tile_k), lambda i, k: (i, k)),   # H
            pl.BlockSpec((tile_k, f_e), lambda i, k: (k, 0)),      # e
            pl.BlockSpec((f_e, f_n), lambda i, k: (0, 0)),         # W_e2n
            pl.BlockSpec((tile_n, 1), lambda i, k: (i, 0)),        # 1/Dn
            pl.BlockSpec(memory_space=pltpu.MemorySpace.SMEM),     # PReLU slope
        ],
        out_specs=pl.BlockSpec((tile_n, f_n), lambda i, k: (i, 0)),
        scratch_shapes=[pltpu.VMEM((tile_n, f_n), jnp.float32)],
        compiler_params=pltpu.CompilerParams(
            dimension_semantics=("parallel", "arbitrary")),
    )(H, e, w2, dn_inv, alpha)


# ---------------------------------------------------------------------------
# Parameter init (matches HyperEncoder.__init__ layer structure).
# ---------------------------------------------------------------------------
def glorot(key, shape):
    fan_in, fan_out = shape
    limit = jnp.sqrt(6.0 / (fan_in + fan_out))
    return jax.random.uniform(key, shape, jnp.float32, -limit, limit)


def init_hyper_encoder(key, in_dim, edge_dim, node_dim, num_layers):
    params = []
    dims_in = [in_dim] + [node_dim] * (num_layers - 1)
    for layer in range(num_layers):
        key, k1, k2 = jax.random.split(key, 3)
        w_n2e = glorot(k1, (dims_in[layer], edge_dim))
        w_e2n = glorot(k2, (edge_dim, node_dim))
        params.append((w_n2e, w_e2n))
    prelu_w = jnp.full((1,), 0.25, jnp.float32)   # single shared nn.PReLU() param
    return params, prelu_w


# ---------------------------------------------------------------------------
# Forward: densify incidence, precompute degrees once, pad to lane/tile
# multiples, run L layers of (node->edge, edge->node) Pallas kernels.
# ---------------------------------------------------------------------------
def hyper_encoder_forward(params, prelu_w, x, hyperedge_index,
                          num_nodes, num_edges, tile=LANE):
    node_idx, edge_idx = hyperedge_index
    # Scatter-add densification (duplicates accumulate, matching PyG message
    # passing); multiplicities are small integers so bf16 below is exact.
    H = jnp.zeros((num_nodes, num_edges), jnp.float32).at[node_idx, edge_idx].add(1.0)

    n_pad = _round_up(num_nodes, tile)
    e_pad = _round_up(num_edges, tile)
    H = jnp.pad(H, ((0, n_pad - num_nodes), (0, e_pad - num_edges)))

    # Degrees computed once, shared by every layer (hyperedge weights == 1).
    dn = H.sum(axis=1, keepdims=True)                     # (N_pad, 1)
    de = H.sum(axis=0)[:, None]                           # (E_pad, 1)
    dn_inv = jnp.where(dn > 0, 1.0 / dn, 0.0)
    de_inv = jnp.where(de > 0, 1.0 / de, 0.0)

    Hb = H.astype(jnp.bfloat16)

    in_dim = x.shape[1]
    f_in = _round_up(in_dim, LANE)
    xb = jnp.pad(x, ((0, n_pad - num_nodes), (0, f_in - in_dim))).astype(jnp.bfloat16)

    n_out = None
    e_out = None
    for (w1, w2) in params:
        d1i, d1o = w1.shape
        d2i, d2o = w2.shape
        w1p = jnp.pad(w1, ((0, _round_up(d1i, LANE) - d1i),
                           (0, _round_up(d1o, LANE) - d1o))).astype(jnp.bfloat16)
        w2p = jnp.pad(w2, ((0, _round_up(d2i, LANE) - d2i),
                           (0, _round_up(d2o, LANE) - d2o))).astype(jnp.bfloat16)

        e_out = node_to_edge(Hb, xb, w1p, de_inv, prelu_w)                 # f32
        n_out = edge_to_node(Hb, e_out.astype(jnp.bfloat16), w2p, dn_inv,  # f32
                             prelu_w)
        xb = n_out.astype(jnp.bfloat16)

    node_dim = params[-1][1].shape[1]
    edge_dim = params[-1][0].shape[1]
    return n_out[:num_nodes, :node_dim], e_out[:num_edges, :edge_dim]


# ---------------------------------------------------------------------------
# References.
# ---------------------------------------------------------------------------
def _reference_f32(params, prelu_w, x, hyperedge_index, num_nodes, num_edges):
    """Pure-f32 JAX reference mirroring the PyTorch module."""
    a = prelu_w[0]
    prelu = lambda t: jnp.where(t >= 0, t, a * t)
    node_idx, edge_idx = hyperedge_index
    H = jnp.zeros((num_nodes, num_edges), jnp.float32).at[node_idx, edge_idx].add(1.0)
    dn = H.sum(axis=1, keepdims=True)
    de = H.sum(axis=0)[:, None]
    dn_inv = jnp.where(dn > 0, 1.0 / dn, 0.0)
    de_inv = jnp.where(de > 0, 1.0 / de, 0.0)
    e = None
    for (w1, w2) in params:
        e = prelu(de_inv * (H.T @ (x @ w1)))
        x = prelu(dn_inv * (H @ (e @ w2)))
    return x, e


def _reference_bf16(params, prelu_w, x, hyperedge_index, num_nodes, num_edges):
    """Reference that mirrors the kernel's bf16-operand / f32-accumulate math."""
    a = prelu_w[0]
    prelu = lambda t: jnp.where(t >= 0, t, a * t)
    node_idx, edge_idx = hyperedge_index
    H = jnp.zeros((num_nodes, num_edges), jnp.float32).at[node_idx, edge_idx].add(1.0)
    dn = H.sum(axis=1, keepdims=True)
    de = H.sum(axis=0)[:, None]
    dn_inv = jnp.where(dn > 0, 1.0 / dn, 0.0)
    de_inv = jnp.where(de > 0, 1.0 / de, 0.0)
    Hb = H.astype(jnp.bfloat16)
    xb = x.astype(jnp.bfloat16)
    n = e = None
    for (w1, w2) in params:
        w1b, w2b = w1.astype(jnp.bfloat16), w2.astype(jnp.bfloat16)
        xw = jnp.dot(xb, w1b, preferred_element_type=jnp.float32).astype(jnp.bfloat16)
        e = prelu(de_inv * lax.dot_general(
            Hb, xw, dimension_numbers=(((0,), (0,)), ((), ())),
            preferred_element_type=jnp.float32))
        ew = jnp.dot(e.astype(jnp.bfloat16), w2b,
                     preferred_element_type=jnp.float32).astype(jnp.bfloat16)
        n = prelu(dn_inv * jnp.dot(Hb, ew, preferred_element_type=jnp.float32))
        xb = n.astype(jnp.bfloat16)
    return n, e


if __name__ == "__main__":
    # Small but multi-tile shapes (N_pad = E_pad = 256 -> 2x2 grids).
    num_nodes, num_edges = 200, 150
    in_dim, edge_dim, node_dim = 32, 32, 32
    num_layers = 2
    nnz = 600

    key = jax.random.PRNGKey(0)
    k_x, k_ni, k_ei, k_params = jax.random.split(key, 4)

    x = jax.random.normal(k_x, (num_nodes, in_dim), jnp.float32)
    node_idx = jax.random.randint(k_ni, (nnz,), 0, num_nodes, jnp.int32)
    edge_idx = jax.random.randint(k_ei, (nnz,), 0, num_edges, jnp.int32)
    hyperedge_index = jnp.stack([node_idx, edge_idx])     # (2, nnz), like PyG

    params, prelu_w = init_hyper_encoder(k_params, in_dim, edge_dim, node_dim,
                                         num_layers)

    n_out, e_out = hyper_encoder_forward(params, prelu_w, x, hyperedge_index,
                                         num_nodes, num_edges)
    n_out = jax.block_until_ready(n_out)
    e_out = jax.block_until_ready(e_out)

    assert n_out.shape == (num_nodes, node_dim)
    assert e_out.shape == (num_edges, edge_dim)

    # Tight check against a reference using the same bf16-operand math.
    n_b, e_b = _reference_bf16(params, prelu_w, x, hyperedge_index,
                               num_nodes, num_edges)
    assert jnp.allclose(n_out, n_b, atol=2e-3, rtol=2e-3), \
        float(jnp.max(jnp.abs(n_out - n_b)))
    assert jnp.allclose(e_out, e_b, atol=2e-3, rtol=2e-3), \
        float(jnp.max(jnp.abs(e_out - e_b)))

    # Loose check against the f32 module semantics (bf16 rounding only).
    n_f, e_f = _reference_f32(params, prelu_w, x, hyperedge_index,
                              num_nodes, num_edges)
    assert jnp.allclose(n_out, n_f, atol=8e-2, rtol=8e-2)
    assert jnp.allclose(e_out, e_f, atol=8e-2, rtol=8e-2)

    print("KERNEL_OK")
</pallas_src>

<mosaic_0001>
module attributes {stable_mosaic.version = 11 : i64} {
  func.func @_node_to_edge_kernel(%arg0: i32, %arg1: i32, %arg2: memref<128x128xbf16, #tpu.memory_space<vmem>>, %arg3: memref<128x128xbf16, #tpu.memory_space<vmem>>, %arg4: memref<128x128xbf16, #tpu.memory_space<vmem>>, %arg5: memref<128x1xf32, #tpu.memory_space<vmem>>, %arg6: memref<1xf32, #tpu.memory_space<smem>>, %arg7: memref<128x128xf32, #tpu.memory_space<vmem>>, %arg8: memref<128x128xf32, #tpu.memory_space<vmem>>) attributes {dimension_semantics = [#tpu.dimension_semantics<parallel>, #tpu.dimension_semantics<arbitrary>], iteration_bounds = array<i64: 2, 2>, scalar_prefetch = 0 : i64, scratch_operands = 1 : i64, tpu.core_type = #tpu.core_type<tc>, window_params = [{transform_indices = @transform_0, window_bounds = array<i64: 128, 128>}, {transform_indices = @transform_1, window_bounds = array<i64: 128, 128>}, {pipeline_mode = #tpu.pipeline_mode<synchronous>, transform_indices = @transform_2, window_bounds = array<i64: 128, 128>}, {transform_indices = @transform_3, window_bounds = array<i64: 128, 1>}, {transform_indices = @transform_4, window_bounds = array<i64: 1>}, {transform_indices = @transform_5, window_bounds = array<i64: 128, 128>}]} {
    %c0_i32 = arith.constant 0 : i32
    %0 = arith.cmpi eq, %arg1, %c0_i32 : i32
    %1 = arith.extui %0 : i1 to i32
    %c0_i32_0 = arith.constant 0 : i32
    %2 = arith.cmpi ne, %1, %c0_i32_0 : i32
    scf.if %2 {
      %cst_12 = arith.constant 0.000000e+00 : f32
      %15 = vector.broadcast %cst_12 : f32 to vector<128x128xf32>
      %c0_13 = arith.constant 0 : index
      %c0_14 = arith.constant 0 : index
      %16 = vector.load %arg8[%c0_13, %c0_14] : memref<128x128xf32, #tpu.memory_space<vmem>>, vector<128x128xf32>
      tpu.vector_store %arg8[%c0_13, %c0_14], %15 {strides = array<i32>} : memref<128x128xf32, #tpu.memory_space<vmem>>, vector<128x128xf32>,
    } else {
    }
    %c0 = arith.constant 0 : index
    %c0_1 = arith.constant 0 : index
    %3 = vector.load %arg3[%c0, %c0_1] : memref<128x128xbf16, #tpu.memory_space<vmem>>, vector<128x128xbf16>
    %c0_2 = arith.constant 0 : index
    %c0_3 = arith.constant 0 : index
    %4 = vector.load %arg4[%c0_2, %c0_3] : memref<128x128xbf16, #tpu.memory_space<vmem>>, vector<128x128xbf16>
    %cst = arith.constant dense<0.000000e+00> : vector<128x128xf32>
    %5 = tpu.matmul %3, %4, %cst {dimension_numbers = #tpu.dot_dimension_numbers<[1], [0], [0], [1], [0, 0, 1, 1], [], []>} : vector<128x128xbf16>, vector<128x128xbf16>, vector<128x128xf32> -> vector<128x128xf32>
    %6 = arith.truncf %5 : vector<128x128xf32> to vector<128x128xbf16>
    %c0_4 = arith.constant 0 : index
    %c0_5 = arith.constant 0 : index
    %7 = vector.load %arg8[%c0_4, %c0_5] : memref<128x128xf32, #tpu.memory_space<vmem>>, vector<128x128xf32>
    %c0_6 = arith.constant 0 : index
    %c0_7 = arith.constant 0 : index
    %8 = vector.load %arg2[%c0_6, %c0_7] : memref<128x128xbf16, #tpu.memory_space<vmem>>, vector<128x128xbf16>
    %cst_8 = arith.constant dense<0.000000e+00> : vector<128x128xf32>
    %9 = tpu.matmul %8, %6, %cst_8 {dimension_numbers = #tpu.dot_dimension_numbers<[0], [0], [1], [1], [0, 1, 1, 1], [], []>} : vector<128x128xbf16>, vector<128x128xbf16>, vector<128x128xf32> -> vector<128x128xf32>
    %10 = arith.addf %7, %9 : vector<128x128xf32>
    %c0_9 = arith.constant 0 : index
    %c0_10 = arith.constant 0 : index
    %11 = vector.load %arg8[%c0_9, %c0_10] : memref<128x128xf32, #tpu.memory_space<vmem>>, vector<128x128xf32>
    tpu.vector_store %arg8[%c0_9, %c0_10], %10 {strides = array<i32>} : memref<128x128xf32, #tpu.memory_space<vmem>>, vector<128x128xf32>,
    %c1_i32 = arith.constant 1 : i32
    %12 = arith.cmpi eq, %arg1, %c1_i32 : i32
    %13 = arith.extui %12 : i1 to i32
    %c0_i32_11 = arith.constant 0 : i32
    %14 = arith.cmpi ne, %13, %c0_i32_11 : i32
    scf.if %14 {
      %c0_12 = arith.constant 0 : index
      %15 = memref.load %arg6[%c0_12] : memref<1xf32, #tpu.memory_space<smem>>
      %c0_13 = arith.constant 0 : index
      %c0_14 = arith.constant 0 : index
      %16 = vector.load %arg5[%c0_13, %c0_14] : memref<128x1xf32, #tpu.memory_space<vmem>>, vector<128x1xf32>
      %c0_15 = arith.constant 0 : index
      %c0_16 = arith.constant 0 : index
      %17 = vector.load %arg8[%c0_15, %c0_16] : memref<128x128xf32, #tpu.memory_space<vmem>>, vector<128x128xf32>
      %18 = vector.broadcast %16 : vector<128x1xf32> to vector<128x128xf32>
      %19 = arith.mulf %18, %17 : vector<128x128xf32>
      %cst_17 = arith.constant 0.000000e+00 : f32
      %20 = vector.broadcast %cst_17 : f32 to vector<128x128xf32>
      %21 = arith.cmpf oge, %19, %20 : vector<128x128xf32>
      %22 = vector.broadcast %15 : f32 to vector<128x128xf32>
      %23 = arith.mulf %22, %19 : vector<128x128xf32>
      %24 = arith.select %21, %19, %23 : vector<128x128xi1>, vector<128x128xf32>
      %c0_18 = arith.constant 0 : index
      %c0_19 = arith.constant 0 : index
      %25 = vector.load %arg7[%c0_18, %c0_19] : memref<128x128xf32, #tpu.memory_space<vmem>>, vector<128x128xf32>
      tpu.vector_store %arg7[%c0_18, %c0_19], %24 {strides = array<i32>} : memref<128x128xf32, #tpu.memory_space<vmem>>, vector<128x128xf32>,
    } else {
    }
    return
  }
  func.func @transform_0(%arg0: i32, %arg1: i32) -> (i32, i32) {
    %c0_i32 = arith.constant 0 : i32
    return %arg1, %arg0 : i32, i32
  }
  func.func @transform_1(%arg0: i32, %arg1: i32) -> (i32, i32) {
    %c0_i32 = arith.constant 0 : i32
    %c0_i32_0 = arith.constant 0 : i32
    return %arg1, %c0_i32 : i32, i32
  }
  func.func @transform_2(%arg0: i32, %arg1: i32) -> (i32, i32) {
    %c0_i32 = arith.constant 0 : i32
    %c0_i32_0 = arith.constant 0 : i32
    %c0_i32_1 = arith.constant 0 : i32
    return %c0_i32, %c0_i32_0 : i32, i32
  }
  func.func @transform_3(%arg0: i32, %arg1: i32) -> (i32, i32) {
    %c0_i32 = arith.constant 0 : i32
    %c0_i32_0 = arith.constant 0 : i32
    return %arg0, %c0_i32 : i32, i32
  }
  func.func @transform_4(%arg0: i32, %arg1: i32) -> i32 {
    %c0_i32 = arith.constant 0 : i32
    %c0_i32_0 = arith.constant 0 : i32
    return %c0_i32 : i32
  }
  func.func @transform_5(%arg0: i32, %arg1: i32) -> (i32, i32) {
    %c0_i32 = arith.constant 0 : i32
    %c0_i32_0 = arith.constant 0 : i32
    return %arg0, %c0_i32 : i32, i32
  }
}

</mosaic_0001>

<bundles_post_ra>
// kernel: tpu_custom_call.1
= control target key start
LH: loop header
LB: loop body
LE: loop exit
PB: predicated region body
PF: predicated region fallthrough
CT: control target
= control target key end

     0   :  { %s2146_s0 = inlined_call_operand.vmem [shape: bf16[256,256], index: 0, kind: input, shape index: {}]   ;;  %s2147_s1 = inlined_call_operand.hbm [shape: bf16[256,128], index: 1, kind: input, shape index: {}]   ;;  %s2148_s2 = inlined_call_operand.hbm [shape: bf16[128,128], index: 2, kind: input, shape index: {}]   ;;  %s2149_s3 = inlined_call_operand.vmem [shape: f32[256,1], index: 3, kind: input, shape index: {}]   ;;  %s2150_s4 = inlined_call_operand.<no memory space> [shape: f32[1], index: 4, kind: input, shape index: {}]   ;;  %s2151_s5 = inlined_call_operand.hbm [shape: f32[256,128], index: 5, kind: output, shape index: {}]  }
   0x1   :  { %2163 = sst [smem:[#allocation24_spill]] %s2151_s5 }
   0x2   :  { %10 = sst [smem:[#allocation3]] %s2150_s4 }
   0x3   :  { %11 = vsyncpa [#allocation6], 0 }
   0x4   :  { %13 = vsyncpa [#allocation6 + $0x1], 0 }
   0x5   :  { %14 = vsyncpa [#allocation9], 0 }
   0x6   :  { %15 = vsyncpa [#allocation7], 0 }
   0x7   :  { %17 = vsyncpa [#allocation7 + $0x1], 0  ;;  %s1786_s20 = smov 0   ;;  %s1788_s21 = smov 0  }
   0x8   :  { %s1790_s22 = smov 0   ;;  %s1792_s23 = smov 0  }
   0x9   :  { %s1794_s24 = smov 0   ;;  %s1796_s25 = smov 0  }
   0xa   :  { %s1798_s26 = smov 0   ;;  %s1800_s4 = smov 0  }
   0xb   :  { %s1802_s27 = smov 0   ;;  %s1804_s28 = smov 0  }
   0xc   :  { %s1806_s29 = smov 0   ;;  %s1808_s30 = smov 0  }
   0xd   :  { %s1810_s6 = smov 0  }
   0xe LB: > { %2164 = sst [smem:[#allocation14_spill]] %s1692_s20  ;;  %s1241_s7 = sadd.s32 4294967295, %s1740_s6   ;;  %s1740_s6 = sphi %s1810_s6, %s23_s6   ;;  %s1736_s30 = sphi %s1808_s30, %s2210_s30   ;;  %s1732_s29 = sphi %s1806_s29, %s2209_s29   ;;  %s1728_s28 = sphi %s1804_s28, %s2208_s28   ;;  %s1724_s27 = sphi %s1802_s27, %s2207_s27   ;;  %s1720_s4 = sphi %s1800_s4, %s2206_s4   ;;  %s1716_s26 = sphi %s1798_s26, %s2205_s26   ;;  %s1712_s25 = sphi %s1796_s25, %s2204_s25   ;;  %s1708_s24 = sphi %s1794_s24, %s2203_s24   ;;  %s1704_s23 = sphi %s1792_s23, %s2202_s23   ;;  %s1700_s22 = sphi %s1790_s22, %s2194_s22   ;;  %s1696_s21 = sphi %s1788_s21, %s2201_s21   ;;  %s1692_s20 = sphi %s1786_s20, %s2200_s20  }
   0xf   : > { %2165 = sst [smem:[#allocation15_spill]] %s1700_s22  ;;  %s32_s9 = sadd.s32 1, %s1732_s29 }
  0x10   : > { %2166 = sst [smem:[#allocation16_spill]] %s1724_s27  ;;  %s35_s10 = sadd.s32 1, %s1736_s30 }
  0x11   : > { %p33_p0 = scmp.ge.s32.totalorder %s32_s9, 2  ;;  %s44_s11 = sadd.s32 1, %s1720_s4 }
  0x12   : > { %p51_p1 = scmp.ne.s32.totalorder %s1720_s4, %s1716_s26  ;;  %p52_p2 = scmp.eq.s32.totalorder %s1740_s6, 0 }
  0x13   : > { %s2212_s9 = smov (%p33_p0, %s32_s9), 0  ;;  %s2214_s10 = smov (!%p33_p0, %s35_s10), %s1736_s30 }
  0x14   : > { %2167 = sst [smem:[#allocation17_spill]] %s2212_s9  ;;  %s39_s12 = ssub.s32 %s1732_s29, %s2212_s9 }
  0x15   : > { %p1864_p3 = por %p52_p2, %p51_p1  ;;  %p37_p4 = scmp.ge.s32.totalorder %s2214_s10, 2 }
  0x16   : > { %p68_p5 = scmp.eq.s32.totalorder %s39_s12, 0  ;;  %s70_s14 = sadd.s32 1, %s1712_s25 }
  0x17   : > { %p77_p6 = scmp.ne.s32.totalorder %s1712_s25, %s1708_s24  ;;  %s2216_s10 = smov (%p37_p4, %s2214_s10), 0 }
  0x18   : > { %2169 = sst [smem:[#allocation18_spill]] %s2216_s10  ;;  %s40_s16 = ssub.s32 %s1736_s30, %s2216_s10 }
  0x19   : > { %s1874_s15 = scalar_select %p68_p5, %s1712_s25, %s70_s14  }
  0x1a   : > { %p1878_p7 = por %p77_p6, %p52_p2  ;;  %s41_s18 = sor.u32 %s40_s16, %s39_s12 }
  0x1b   : > { %2170 = sst [smem:[#allocation19_spill]] %s1874_s15  ;;  %p83_p8 = scmp.ne.s32.totalorder %s1708_s24, %s1704_s23 }
  0x1c   : > { %s2171_s17 = scalar_select %p1878_p7, 1, 0 }
  0x1d   : > { %p42_p9 = scmp.eq.s32.totalorder %s41_s18, 0  ;;  %p1886_p10 = scmp.eq.s32.totalorder %s1241_s7, 0 }
  0x1e   : > { %p162_p11 = scmp.eq.s32.totalorder %s40_s16, 0  ;;  %s164_s8 = sadd.s32 1, %s1700_s22 }
  0x1f   : > { %s1892_s14 = scalar_select %p42_p9, %s1720_s4, %s44_s11  }
  0x20   : > { %p1896_p12 = por %p1886_p10, %p83_p8  ;;  %p174_p13 = scmp.ne.s32.totalorder %s1700_s22, %s1696_s21 }
  0x21   : > { %2173 = sst [smem:[#allocation20_spill]] %s1892_s14  ;;  %p175_p0 = scmp.eq.s32.totalorder %s1241_s7, 3 }
  0x22   : > { %s2174_s10 = scalar_select %p1896_p12, 1, 0 }
  0x23   : > { %s1903_s12 = scalar_select %p162_p11, %s1700_s22, %s164_s8  }
  0x24   : > { %p180_p1 = scmp.ne.s32.totalorder %s1696_s21, %s1692_s20  ;;  %s2176_s23 = sadd.s32 4294967294, %s1740_s6  }
  0x25   : > { %2175 = sst [smem:[#allocation21_spill]] %s1903_s12  ;;  %p181_p2 = scmp.eq.s32.totalorder %s2176_s23, 3 }
  0x26   : > { %p1243_p4 = scmp.ge.s32.totalorder %s1740_s6, 1  ;;  %p1912_p5 = por %p175_p0, %p174_p13 }
  0x27   : > { %p188_p6 = scmp.lt.s32.totalorder %s1740_s6, 5  ;;  %p1917_p9 = por %p181_p2, %p180_p1 }
  0x28   : > { %s2177_s16 = scalar_select %p1912_p5, 1, 0 }
  0x29   : > { %s2179_s11 = scalar_select %p1917_p9, 1, 0 }
  0x2a   : > { %2178 = sst [smem:[#allocation22_spill]] %s2177_s16  ;;  %p1921_p8 = pnand %p1243_p4, %p188_p6 }
  0x2b   : > { %2180 = sst [smem:[#allocation23_spill]] %s2179_s11  ;;  %s1742_s8 = smov [#allocation8]  }
  0x2c   : > { %s200_s7 = sshll.u32 %s1742_s8, 4  ;;  %p1398_p11 = pneg %p1921_p8  ;;  %s201_s7 = int_to_ptr.vmem [resolvable:$true] %s200_s7 }
  0x2d   : > { %s1559_s23 = scalar_lea.vmem %s201_s7, 1024  ;;  %p1567_p2 = scmp.lt.s32.totalorder %s201_s7, %s201_s7 }
  0x2e   : > { %p1399_p13 = pnand %p1398_p11, %p1886_p10  ;;  %p1560_p5 = scmp.ne.s32.totalorder %s201_s7, %s1559_s23 }
  0x2f   : > { %p1568_p7 = scmp.lt.s32.totalorder %s1559_s23, %s1559_s23 }
  0x30   : > { %p1550_p0 = pneg %p1399_p13 }
  0x31   : > { %p1569_p9 = por %p1568_p7, %p1567_p2 }
  0x32   : > { %p1562_p12 = pnand %p1560_p5, %p1550_p0 }
  0x34   : > { %p1563_p1 = pneg %p1562_p12 }
  0x36   : > { %p1570_p4 = pnand %p1569_p9, %p1563_p1 }
  0x38   : > { %1573 = shalt.err (!%p1570_p4)
}
  0x39   : > { %s1743_s9 = smov 64   ;;  %s1744_s14 = smov 4  }
  0x3a   : > { %1401 = dma.hbm_to_vmem [thread:$0]  (!%p1399_p13), %s2148_s2, 1024, %s201_s7, [#allocation9], %s1743_s9, %s1743_s9, %s1744_s14  }
  0x3b   : > { %p1245_p6 = scmp.ge.s32.totalorder %s1740_s6, 4 }
  0x3d   : > { %213 = sbr.rel (%p1245_p6) target bundleno = 98 (0x62), region = 24 }
  0x42   : > { %216 = sbr.rel (!%p1864_p3) target bundleno = 82 (0x52), region = 28  ;;  %s218_s8 = sand.u32 (%p1864_p3), 1, %s1720_s4  }
  0x43   : > { %s1291_s23 = sshll.u32 (%p1864_p3), %s1732_s29, 5  ;;  %s1246_s22 = sshll.u32 (%p1864_p3), %s218_s8, 6 }
  0x44   : > { %s223_s11 = sadd.s32 (%p1864_p3), %s1736_s30, %s1291_s23  ;;  %s220_s9 = scalar_lea.vmem (%p1864_p3), [#allocation4], %s1246_s22 }
  0x45   : > { %s1249_s20 = sshll.u32 (%p1864_p3), %s223_s11, 2 }
  0x46   : > { %s1941_s27 = scalar_lea.vmem (%p1864_p3), %s2146_s0, %s1249_s20 }
  0x47   : > { %v242_v0 = vld [vmem:[%s1941_s27] sm:$0xf]  ;;  %v244_v1 = vld [vmem:[%s1941_s27 + $0x8] sm:$0xf]  ;;  %v246_v2 = vld [vmem:[%s1941_s27 + $0x10] sm:$0xf] }
  0x48   : > { %243 = vst [vmem:[%s220_s9] sm:$0xf] %v242_v0  ;;  %245 = vst [vmem:[%s220_s9 + $0x4] sm:$0xf] %v244_v1  ;;  %v248_v3 = vld [vmem:[%s1941_s27 + $0x18] sm:$0xf] }
  0x49   : > { %247 = vst [vmem:[%s220_s9 + $0x8] sm:$0xf] %v246_v2  ;;  %v250_v4 = vld [vmem:[%s1941_s27 + $0x20] sm:$0xf]  ;;  %v252_v5 = vld [vmem:[%s1941_s27 + $0x28] sm:$0xf] }
  0x4a   : > { %249 = vst [vmem:[%s220_s9 + $0xc] sm:$0xf] %v248_v3  ;;  %251 = vst [vmem:[%s220_s9 + $0x10] sm:$0xf] %v250_v4  ;;  %v254_v6 = vld [vmem:[%s1941_s27 + $0x30] sm:$0xf] }
  0x4b   : > { %253 = vst [vmem:[%s220_s9 + $0x14] sm:$0xf] %v252_v5  ;;  %v256_v7 = vld [vmem:[%s1941_s27 + $0x38] sm:$0xf]  ;;  %v258_v8 = vld [vmem:[%s1941_s27 + $0x40] sm:$0xf] }
  0x4c   : > { %255 = vst [vmem:[%s220_s9 + $0x18] sm:$0xf] %v254_v6  ;;  %257 = vst [vmem:[%s220_s9 + $0x1c] sm:$0xf] %v256_v7  ;;  %v260_v9 = vld [vmem:[%s1941_s27 + $0x48] sm:$0xf] }
  0x4d   : > { %259 = vst [vmem:[%s220_s9 + $0x20] sm:$0xf] %v258_v8  ;;  %v262_v10 = vld [vmem:[%s1941_s27 + $0x50] sm:$0xf]  ;;  %v264_v11 = vld [vmem:[%s1941_s27 + $0x58] sm:$0xf] }
  0x4e   : > { %261 = vst [vmem:[%s220_s9 + $0x24] sm:$0xf] %v260_v9  ;;  %263 = vst [vmem:[%s220_s9 + $0x28] sm:$0xf] %v262_v10  ;;  %v266_v12 = vld [vmem:[%s1941_s27 + $0x60] sm:$0xf] }
  0x4f   : > { %265 = vst [vmem:[%s220_s9 + $0x2c] sm:$0xf] %v264_v11  ;;  %v268_v13 = vld [vmem:[%s1941_s27 + $0x68] sm:$0xf]  ;;  %v270_v14 = vld [vmem:[%s1941_s27 + $0x70] sm:$0xf] }
  0x50   : > { %267 = vst [vmem:[%s220_s9 + $0x30] sm:$0xf] %v266_v12  ;;  %269 = vst [vmem:[%s220_s9 + $0x34] sm:$0xf] %v268_v13  ;;  %v272_v15 = vld [vmem:[%s1941_s27 + $0x78] sm:$0xf] }
  0x51   : > { %271 = vst [vmem:[%s220_s9 + $0x38] sm:$0xf] %v270_v14  ;;  %273 = vst [vmem:[%s220_s9 + $0x3c] sm:$0xf] %v272_v15 }
  0x52 PF: > { %s330_s5 = sand.u32 1, %s1712_s25   ;;  %s1292_s20 = sshll.u32 %s1732_s29, 10 }
  0x53   : > { %s1250_s22 = sshll.u32 %s330_s5, 6  ;;  %s340_s14 = scalar_lea.hbm %s2147_s1, %s1292_s20 }
  0x54   : > { %s334_s12 = scalar_lea.vmem [#allocation5], %s1250_s22  ;;  %s331_s11 = scalar_lea.sflag [#allocation6], %s330_s5 }
  0x55   : > { %s341_s16 = sshll.u32 %s334_s12, 4  ;;  %p2182_p7 = scmp.ne.s32.totalorder %s2171_s17, 0  ;;  %s342_s16 = int_to_ptr.vmem [resolvable:$true] %s341_s16 }
  0x56   : > { %s1586_s7 = scalar_lea.vmem %s342_s16, 1024  ;;  %s1745_s27 = smov [#allocation5]  }
  0x57   : > { %p1587_p3 = scmp.ne.s32.totalorder %s342_s16, %s1586_s7  ;;  %s1590_s8 = sshll.u32 %s1745_s27, 4  ;;  %s1591_s8 = int_to_ptr.vmem [resolvable:$false] %s1590_s8 }
  0x58   : > { %s1592_s23 = scalar_lea.vmem %s1591_s8, 2048  ;;  %p1593_p9 = scmp.lt.s32.totalorder %s342_s16, %s1591_s8 }
  0x59   : > { %p1588_p12 = pnand %p1587_p3, %p2182_p7  ;;  %p1594_p11 = scmp.lt.s32.totalorder %s1592_s23, %s1586_s7 }
  0x5b   : > { %p1589_p5 = pneg %p1588_p12  ;;  %p1595_p13 = por %p1594_p11, %p1593_p9 }
  0x5d   : > { %p1596_p0 = pnand %p1595_p13, %p1589_p5 }
  0x5f   : > { %1599 = shalt.err (!%p1596_p0)
}
  0x60   : > { %s1746_s9 = smov 64   ;;  %s1747_s20 = smov 4  }
  0x61   : > { %1392 = dma.hbm_to_vmem [thread:$0]  (%p2182_p7), %s340_s14, 1024, %s342_s16, %s331_s11, %s1746_s9, %s1746_s9, %s1747_s20  }
  0x62 PF: > { %362 = sbr.rel (%p1921_p8) target bundleno = 832 (0x340), region = 77  ;;  %s365_s5 = sand.u32 (!%p1921_p8), 1, %s1716_s26  }
  0x63   : > { %s371_s22 = sand.u32 (!%p1921_p8), 1, %s1708_s24   ;;  %s1254_s13 = sshll.u32 (!%p1921_p8), %s365_s5, 6 }
  0x64   : > { %s1255_s15 = sshll.u32 (!%p1921_p8), %s371_s22, 6  ;;  %s1972_s12 = scalar_lea.vmem (!%p1921_p8), [#allocation4], %s1254_s13 }
  0x65   : > { %s372_s7 = scalar_lea.sflag (!%p1921_p8), [#allocation6], %s371_s22  ;;  %s1974_s27 = scalar_lea.vmem (!%p1921_p8), [#allocation5], %s1255_s15 }
  0x66   : > { %p2183_p1 = scmp.ne.s32.totalorder (!%p1921_p8), %s2174_s10, 0 }
  0x68   : > { %1679 = dma.done.wait (%p2183_p1), %s372_s7, 1024  }
  0x69   : > { %1681 = vsyncadd (%p2183_p1), %s372_s7, 4294966272 }
  0x6a   : > { %1683 = dma.done.wait (%p1886_p10), [#allocation9], 1024  }
  0x6b   : > { %1685 = vsyncadd (%p1886_p10), [#allocation9], 4294966272  ;;  %s412_s26 = sand.u32 1, %s1696_s21   ;;  %s1258_s17 = sshll.u32 %s1728_s28, 4 }
  0x6c   : > { %s1257_s18 = sshll.u32 %s412_s26, 7  ;;  %p418_p8 = scmp.lt.s32.totalorder %s1258_s17, 31 }
  0x6d   : > { %s1993_s8 = scalar_lea.vmem [#allocation10], %s1257_s18  ;;  %s2184_s23 = sld [smem:[#allocation16_spill]] }
  0x6e   : > { %s2218_s17 = smov (!%p418_p8, %s1258_s17), 31 }
  0x6f   : > { %s1259_s14 = sshll.u32 %s2218_s17, 3 }
  0x70   : > { %s1991_s10 = scalar_lea.vmem %s2149_s3, %s1259_s14 }
  0x73   : > { %p1260_p2 = scmp.ne.s32.totalorder %s2184_s23, 0 }
  0x75   : > { %428 = sbr.rel (%p1260_p2) target bundleno = 131 (0x83), region = 93 }
  0x7a   : > { %v1748_v16 = vmov 0.0  }
  0x7b   : > { %429 = vst [vmem:[#allocation2 + $0x30] sm:$0xff] %v1748_v16  ;;  %430 = vst [vmem:[#allocation2] sm:$0xff] %v1748_v16 }
  0x7c   : > { %431 = vst [vmem:[#allocation2 + $0x58] sm:$0xff] %v1748_v16  ;;  %432 = vst [vmem:[#allocation2 + $0x18] sm:$0xff] %v1748_v16 }
  0x7d   : > { %433 = vst [vmem:[#allocation2 + $0x50] sm:$0xff] %v1748_v16  ;;  %434 = vst [vmem:[#allocation2 + $0x68] sm:$0xff] %v1748_v16 }
  0x7e   : > { %435 = vst [vmem:[#allocation2 + $0x8] sm:$0xff] %v1748_v16  ;;  %436 = vst [vmem:[#allocation2 + $0x48] sm:$0xff] %v1748_v16 }
  0x7f   : > { %437 = vst [vmem:[#allocation2 + $0x40] sm:$0xff] %v1748_v16  ;;  %438 = vst [vmem:[#allocation2 + $0x20] sm:$0xff] %v1748_v16 }
  0x80   : > { %439 = vst [vmem:[#allocation2 + $0x10] sm:$0xff] %v1748_v16  ;;  %440 = vst [vmem:[#allocation2 + $0x38] sm:$0xff] %v1748_v16 }
  0x81   : > { %441 = vst [vmem:[#allocation2 + $0x60] sm:$0xff] %v1748_v16  ;;  %442 = vst [vmem:[#allocation2 + $0x70] sm:$0xff] %v1748_v16 }
  0x82   : > { %443 = vst [vmem:[#allocation2 + $0x78] sm:$0xff] %v1748_v16  ;;  %444 = vst [vmem:[#allocation2 + $0x28] sm:$0xff] %v1748_v16 }
  0x83 PF: > { %v1522_v17 = vld [vmem:[#allocation8 + $0x38] sm:$0xff]   ;;  %v1523_v18 = vld [vmem:[#allocation8 + $0x30] sm:$0xff]   ;;  %v1524_v19 = vld [vmem:[#allocation8 + $0x28] sm:$0xff]   ;;  %s2185_s19 = sld [smem:[#allocation16_spill]] }
  0x84   : > { %1326 = vmatprep.subr.bf16.mxu0 %v1522_v17  ;;  %v1525_v20 = vld [vmem:[#allocation8 + $0x20] sm:$0xff]   ;;  %v1526_v22 = vld [vmem:[#allocation8 + $0x18] sm:$0xff]   ;;  %v1527_v23 = vld [vmem:[#allocation8 + $0x10] sm:$0xff]  }
  0x85   : > { %1327 = vmatpush3.bf16.msra.mxu0 %v1522_v17  ;;  %v1530_v21 = vld [vmem:[%s1974_s27] sm:$0xff]   ;;  %v1539_v25 = vld [vmem:[%s1972_s12 + $0x8] sm:$0xff]   ;;  %v1540_v27 = vld [vmem:[%s1972_s12 + $0x10] sm:$0xff]  }
  0x86   : > { %1328 = vmatprep.subr.bf16.mxu0 %v1523_v18  ;;  %1342 = vmatprep.mubr.bf16.mxu0 %v1530_v21  ;;  %v1538_v24 = vld [vmem:[%s1972_s12] sm:$0xff]   ;;  %v1528_v26 = vld [vmem:[#allocation8 + $0x8] sm:$0xff]   ;;  %v1541_v29 = vld [vmem:[%s1972_s12 + $0x18] sm:$0xff]  }
  0x87   : > { %758 = vxpose.xlu0.c.b16.start [1/8] %v1538_v24, 128  ;;  %v1529_v28 = vld [vmem:[#allocation8] sm:$0xff]   ;;  %v1531_v30 = vld [vmem:[%s1974_s27 + $0x8] sm:$0xff]   ;;  %v1532_v32 = vld [vmem:[%s1974_s27 + $0x10] sm:$0xff]  }
  0x88   : > { %v1542_v31 = vld [vmem:[%s1972_s12 + $0x20] sm:$0xff]   ;;  %v1543_v33 = vld [vmem:[%s1972_s12 + $0x28] sm:$0xff]   ;;  %v1533_v34 = vld [vmem:[%s1974_s27 + $0x18] sm:$0xff]  }
  0x89   : > { %1329 = vmatpush3.bf16.msra.mxu0 %v1523_v18  ;;  %v1544_v35 = vld [vmem:[%s1972_s12 + $0x30] sm:$0xff]   ;;  %v1534_v36 = vld [vmem:[%s1974_s27 + $0x20] sm:$0xff]   ;;  %v1545_v37 = vld [vmem:[%s1972_s12 + $0x38] sm:$0xff]   ;;  %p1285_p10 = scmp.ne.s32.totalorder %s2185_s19, 1 }
  0x8a   : > { %1330 = vmatprep.subr.bf16.mxu0 %v1524_v19  ;;  %v1535_v38 = vld [vmem:[%s1974_s27 + $0x28] sm:$0xff]   ;;  %v1536_v39 = vld [vmem:[%s1974_s27 + $0x30] sm:$0xff]   ;;  %v1537_v40 = vld [vmem:[%s1974_s27 + $0x38] sm:$0xff]   ;;  %s907_s9 = sld [smem:[#allocation3]] (!%p1285_p10) }
  0x8b   : > { %759 = vxpose.xlu0.c.b16.cont [2/8] %v1539_v25, 128  ;;  %v680_v9 = vld [vmem:[#allocation2 + $0x58] sm:$0xff]  ;;  %v678_v11 = vld [vmem:[#allocation2 + $0x30] sm:$0xff]  ;;  %v679_v17 = vld [vmem:[#allocation2] sm:$0xff] }
  0x8c   : > { %v681_v14 = vld [vmem:[#allocation2 + $0x18] sm:$0xff] }
  0x8d   : > { %1331 = vmatpush3.bf16.msra.mxu0 %v1524_v19 }
  0x8e   : > { %1332 = vmatprep.subr.bf16.mxu0 %v1525_v20 }
  0x8f   : > { %760 = vxpose.xlu0.c.b16.cont [3/8] %v1540_v27, 128 }
  0x91   : > { %1333 = vmatpush3.bf16.msra.mxu0 %v1525_v20  ;;  %v684_v20 = vld [vmem:[#allocation2 + $0x8] sm:$0xff] }
  0x92   : > { %1334 = vmatprep.subr.bf16.mxu0 %v1526_v22 }
  0x93   : > { %761 = vxpose.xlu0.c.b16.cont [4/8] %v1541_v29, 128  ;;  %v683_v29 = vld [vmem:[#allocation2 + $0x68] sm:$0xff] }
  0x95   : > { %1335 = vmatpush3.bf16.msra.mxu0 %v1526_v22 }
  0x96   : > { %1336 = vmatprep.subr.bf16.mxu0 %v1527_v23 }
  0x97   : > { %762 = vxpose.xlu0.c.b16.cont [5/8] %v1542_v31, 128 }
  0x99   : > { %1337 = vmatpush3.bf16.msra.mxu0 %v1527_v23  ;;  %v682_v23 = vld [vmem:[#allocation2 + $0x50] sm:$0xff] }
  0x9a   : > { %1338 = vmatprep.subr.bf16.mxu0 %v1528_v26 }
  0x9b   : > { %763 = vxpose.xlu0.c.b16.cont [6/8] %v1543_v33, 128 }
  0x9d   : > { %1339 = vmatpush3.bf16.msra.mxu0 %v1528_v26  ;;  %v685_v26 = vld [vmem:[#allocation2 + $0x48] sm:$0xff] }
  0x9e   : > { %1340 = vmatprep.subr.bf16.mxu0 %v1529_v28 }
  0x9f   : > { %764 = vxpose.xlu0.c.b16.cont [7/8] %v1544_v35, 128  ;;  %v686_v35 = vld [vmem:[#allocation2 + $0x40] sm:$0xff] }
  0xa1   : > { %1341 = vmatpush3.bf16.msra.mxu0 %v1529_v28 }
  0xa3   : > { %765 = vxpose.xlu0.c.b16.end [8/8] %v1545_v37, 128 }
  0xa4   : > { %1343 = vmatmul.mubr.bf16.vlgmr.msra.gmra.mxu0 %v1531_v30 }
  0xa5   : > { %1346 = vmatprep.mubr.bf16.mxu0 %v1532_v32  ;;  %v688_v32 = vld [vmem:[#allocation2 + $0x10] sm:$0xff] }
  0xac   : > { %1347 = vmatmul.mubr.bf16.gmra.mxu0 %v1533_v34 }
  0xad   : > { %1350 = vmatprep.mubr.bf16.mxu0 %v1534_v36 }
  0xb4   : > { %1351 = vmatmul.mubr.bf16.gmra.mxu0 %v1535_v38  ;;  %v689_v38 = vld [vmem:[#allocation2 + $0x38] sm:$0xff] }
  0xb5   : > { %1354 = vmatprep.mubr.bf16.mxu0 %v1536_v39 }
  0xbc   : > { %1355 = vmatmul.mubr.bf16.gmra.mxu0 %v1537_v40 }
  0xe9   : > { %v766_v41 = vpop.trf.xlu0 }
  0xea   : > { %1374 = vmatprep.mubr.bf16.mxu1 %v766_v41  ;;  %v687_v41 = vld [vmem:[#allocation2 + $0x20] sm:$0xff] }
  0xed   : > { %v767_v0 = vpop.trf.xlu0 }
  0xf1   : > { %v768_v2 = vpop.trf.xlu0 }
  0xf5   : > { %v769_v4 = vpop.trf.xlu0 }
  0xf9   : > { %v770_v5 = vpop.trf.xlu0 }
  0xfd   : > { %v771_v6 = vpop.trf.xlu0 }
 0x101   : > { %v772_v7 = vpop.trf.xlu0 }
 0x105   : > { %v773_v8 = vpop.trf.xlu0 }
 0x164   : > { %v1344_v42 = vpop.f32.mrf.mxu0 }
 0x166   : > { %v607_v43 = vpop.f32.mrf.mxu0 }
 0x168   : > { %v1345_v44 = vpop.f32.mrf.mxu0 }
 0x169   : > { %v671_v1 = vpack.c.bf16 %v1345_v44, %v1344_v42  ;;  %v692_v44 = vld [vmem:[#allocation2 + $0x78] sm:$0xff] }
 0x16a   : > { %v610_v45 = vpop.f32.mrf.mxu0 }
 0x16b   : > { %v670_v3 = vpack.c.bf16 %v610_v45, %v607_v43 }
 0x16c   : > { %v1348_v46 = vpop.f32.mrf.mxu0 }
 0x16e   : > { %v623_v47 = vpop.f32.mrf.mxu0 }
 0x170   : > { %v1349_v48 = vpop.f32.mrf.mxu0 }
 0x171   : > { %v673_v62 = vpack.c.bf16 %v1349_v48, %v1348_v46 }
 0x172   : > { %v626_v49 = vpop.f32.mrf.mxu0 }
 0x173   : > { %v672_v63 = vpack.c.bf16 %v626_v49, %v623_v47  ;;  %v690_v47 = vld [vmem:[#allocation2 + $0x60] sm:$0xff] }
 0x174   : > { %v1352_v50 = vpop.f32.mrf.mxu0 }
 0x176   : > { %v639_v51 = vpop.f32.mrf.mxu0 }
 0x178   : > { %v1353_v52 = vpop.f32.mrf.mxu0 }
 0x179   : > { %v675_v60 = vpack.c.bf16 %v1353_v52, %v1352_v50  ;;  %v693_v50 = vld [vmem:[#allocation2 + $0x28] sm:$0xff] }
 0x17a   : > { %v642_v53 = vpop.f32.mrf.mxu0 }
 0x17b   : > { %v674_v61 = vpack.c.bf16 %v642_v53, %v639_v51  ;;  %v691_v53 = vld [vmem:[#allocation2 + $0x70] sm:$0xff] }
 0x17c   : > { %v1356_v54 = vpop.f32.mrf.mxu0 }
 0x17e   : > { %v655_v55 = vpop.f32.mrf.mxu0 }
 0x180   : > { %v1357_v56 = vpop.f32.mrf.mxu0 }
 0x181   : > { %v677_v57 = vpack.c.bf16 %v1357_v56, %v1356_v54 }
 0x182   : > { %v658_v58 = vpop.f32.mrf.mxu0 }
 0x183   : > { %v676_v59 = vpack.c.bf16 %v658_v58, %v655_v55  ;;  %1358 = vmatprep.subr.bf16.mxu1 %v677_v57 }
 0x184   : > { %1359 = vmatpush3.bf16.msra.mxu1 %v677_v57 }
 0x185   : > { %1360 = vmatprep.subr.bf16.mxu1 %v676_v59 }
 0x188   : > { %1361 = vmatpush3.bf16.msra.mxu1 %v676_v59 }
 0x189   : > { %1362 = vmatprep.subr.bf16.mxu1 %v675_v60 }
 0x18c   : > { %1363 = vmatpush3.bf16.msra.mxu1 %v675_v60 }
 0x18d   : > { %1364 = vmatprep.subr.bf16.mxu1 %v674_v61 }
 0x190   : > { %1365 = vmatpush3.bf16.msra.mxu1 %v674_v61 }
 0x191   : > { %1366 = vmatprep.subr.bf16.mxu1 %v673_v62 }
 0x194   : > { %1367 = vmatpush3.bf16.msra.mxu1 %v673_v62 }
 0x195   : > { %1368 = vmatprep.subr.bf16.mxu1 %v672_v63 }
 0x198   : > { %1369 = vmatpush3.bf16.msra.mxu1 %v672_v63 }
 0x199   : > { %1370 = vmatprep.subr.bf16.mxu1 %v671_v1 }
 0x19c   : > { %1371 = vmatpush3.bf16.msra.mxu1 %v671_v1 }
 0x19d   : > { %1372 = vmatprep.subr.bf16.mxu1 %v670_v3 }
 0x1a0   : > { %1373 = vmatpush3.bf16.msra.mxu1 %v670_v3 }
 0x1a3   : > { %1375 = vmatmul.mubr.bf16.vlgmr.msra.gmra.mxu1 %v767_v0 }
 0x1a4   : > { %1378 = vmatprep.mubr.bf16.mxu1 %v768_v2 }
 0x1ab   : > { %1379 = vmatmul.mubr.bf16.gmra.mxu1 %v769_v4 }
 0x1ac   : > { %1382 = vmatprep.mubr.bf16.mxu1 %v770_v5 }
 0x1b3   : > { %1383 = vmatmul.mubr.bf16.gmra.mxu1 %v771_v6 }
 0x1b4   : > { %1386 = vmatprep.mubr.bf16.mxu1 %v772_v7 }
 0x1bb   : > { %1387 = vmatmul.mubr.bf16.gmra.mxu1 %v773_v8 }
 0x263   : > { %v1376_v10 = vpop.f32.mrf.mxu1 }
 0x264   : > { %v873_v12 = vadd.f32 %v1376_v10, %v680_v9 }
 0x265   : > { %v808_v13 = vpop.f32.mrf.mxu1 }
 0x266   : > { %889 = vst [vmem:[#allocation2 + $0x58] sm:$0xff] %v873_v12  ;;  %v871_v15 = vadd.f32 %v808_v13, %v678_v11 }
 0x267   : > { %v1377_v16 = vpop.f32.mrf.mxu1 }
 0x268   : > { %887 = vst [vmem:[#allocation2 + $0x30] sm:$0xff] %v871_v15  ;;  %v874_v18 = vadd.f32 %v1377_v16, %v681_v14 }
 0x269   : > { %v811_v19 = vpop.f32.mrf.mxu1 }
 0x26a   : > { %890 = vst [vmem:[#allocation2 + $0x18] sm:$0xff] %v874_v18  ;;  %v872_v21 = vadd.f32 %v811_v19, %v679_v17 }
 0x26b   : > { %v1380_v22 = vpop.f32.mrf.mxu1 }
 0x26c   : > { %888 = vst [vmem:[#allocation2] sm:$0xff] %v872_v21  ;;  %v877_v24 = vadd.f32 %v1380_v22, %v684_v20 }
 0x26d   : > { %v824_v25 = vpop.f32.mrf.mxu1 }
 0x26e   : > { %893 = vst [vmem:[#allocation2 + $0x8] sm:$0xff] %v877_v24  ;;  %v875_v27 = vadd.f32 %v824_v25, %v682_v23 }
 0x26f   : > { %v1381_v28 = vpop.f32.mrf.mxu1 }
 0x270   : > { %891 = vst [vmem:[#allocation2 + $0x50] sm:$0xff] %v875_v27  ;;  %v878_v30 = vadd.f32 %v1381_v28, %v685_v26 }
 0x271   : > { %v827_v31 = vpop.f32.mrf.mxu1 }
 0x272   : > { %894 = vst [vmem:[#allocation2 + $0x48] sm:$0xff] %v878_v30  ;;  %v876_v33 = vadd.f32 %v827_v31, %v683_v29 }
 0x273   : > { %v1384_v34 = vpop.f32.mrf.mxu1 }
 0x274   : > { %892 = vst [vmem:[#allocation2 + $0x68] sm:$0xff] %v876_v33  ;;  %v881_v36 = vadd.f32 %v1384_v34, %v688_v32 }
 0x275   : > { %v840_v37 = vpop.f32.mrf.mxu1 }
 0x276   : > { %897 = vst [vmem:[#allocation2 + $0x10] sm:$0xff] %v881_v36  ;;  %v879_v39 = vadd.f32 %v840_v37, %v686_v35 }
 0x277   : > { %v1385_v40 = vpop.f32.mrf.mxu1 }
 0x278   : > { %895 = vst [vmem:[#allocation2 + $0x40] sm:$0xff] %v879_v39  ;;  %v882_v42 = vadd.f32 %v1385_v40, %v689_v38 }
 0x279   : > { %v843_v43 = vpop.f32.mrf.mxu1 }
 0x27a   : > { %898 = vst [vmem:[#allocation2 + $0x38] sm:$0xff] %v882_v42  ;;  %v880_v45 = vadd.f32 %v843_v43, %v687_v41 }
 0x27b   : > { %v1388_v46 = vpop.f32.mrf.mxu1 }
 0x27c   : > { %896 = vst [vmem:[#allocation2 + $0x20] sm:$0xff] %v880_v45  ;;  %v885_v48 = vadd.f32 %v1388_v46, %v692_v44 }
 0x27d   : > { %v856_v49 = vpop.f32.mrf.mxu1 }
 0x27e   : > { %901 = vst [vmem:[#allocation2 + $0x78] sm:$0xff] %v885_v48  ;;  %v883_v51 = vadd.f32 %v856_v49, %v690_v47 }
 0x27f   : > { %v1389_v52 = vpop.f32.mrf.mxu1 }
 0x280   : > { %899 = vst [vmem:[#allocation2 + $0x60] sm:$0xff] %v883_v51  ;;  %v886_v54 = vadd.f32 %v1389_v52, %v693_v50  ;;  %906 = sbr.rel (%p1285_p10) target bundleno = 805 (0x325), region = 97 }
 0x281   : > { %v859_v55 = vpop.f32.mrf.mxu1 }
 0x282   : > { %902 = vst [vmem:[#allocation2 + $0x28] sm:$0xff] %v886_v54  ;;  %v884_v56 = vadd.f32 %v859_v55, %v691_v53 }
 0x284   : > { %900 = vst [vmem:[#allocation2 + $0x70] sm:$0xff] %v884_v56 }
 0x285   : > { %v910_v57 = vld [vmem:[%s1991_s10 + $0x10] sm:$0xff]  ;;  %v908_v58 = vld [vmem:[%s1991_s10] sm:$0xff]  ;;  %v1749_v59 = vmov 0   ;;  %v911_v60 = vld [vmem:[%s1991_s10 + $0x18] sm:$0xff]  ;;  %v2029_v13 = vstv %s907_s9 }
 0x286   : > { %1547 = vset.pattern.permute.xlu1 %v1749_v59  ;;  %1546 = vset.pattern.permute.xlu0 %v1749_v59  ;;  %v909_v61 = vld [vmem:[%s1991_s10 + $0x8] sm:$0xff]  ;;  %v912_v63 = vld [vmem:[%s1991_s10 + $0x20] sm:$0xff]  ;;  %v915_v0 = vld [vmem:[%s1991_s10 + $0x38] sm:$0xff] }
 0x287   : > { %952 = vperm.xlu1 %1547, %v910_v57   ;;  %942 = vperm.xlu0 %1546, %v908_v58   ;;  %v913_v62 = vld [vmem:[%s1991_s10 + $0x28] sm:$0xff]  ;;  %v914_v1 = vld [vmem:[%s1991_s10 + $0x30] sm:$0xff]  ;;  %v916_v3 = vld [vmem:[%s1991_s10 + $0x40] sm:$0xff] }
 0x288   : > { %v917_v2 = vld [vmem:[%s1991_s10 + $0x48] sm:$0xff]  ;;  %v919_v4 = vld [vmem:[%s1991_s10 + $0x58] sm:$0xff]  ;;  %v918_v5 = vld [vmem:[%s1991_s10 + $0x50] sm:$0xff] }
 0x289   : > { %v921_v6 = vld [vmem:[%s1991_s10 + $0x68] sm:$0xff]  ;;  %v920_v7 = vld [vmem:[%s1991_s10 + $0x60] sm:$0xff]  ;;  %v923_v8 = vld [vmem:[%s1991_s10 + $0x78] sm:$0xff] }
 0x28a   : > { %v922_v9 = vld [vmem:[%s1991_s10 + $0x70] sm:$0xff]  ;;  %v926_v10 = vld [vmem:[#allocation2 + $0x58] sm:$0xff]  ;;  %v925_v18 = vld [vmem:[#allocation2] sm:$0xff] }
 0x28b   : > { %957 = vperm.xlu1 %1547, %v911_v60   ;;  %947 = vperm.xlu0 %1546, %v909_v61   ;;  %v924_v11 = vld [vmem:[#allocation2 + $0x30] sm:$0xff]  ;;  %v927_v17 = vld [vmem:[#allocation2 + $0x18] sm:$0xff]  ;;  %v929_v27 = vld [vmem:[#allocation2 + $0x68] sm:$0xff] }
 0x28c   : > { %v928_v28 = vld [vmem:[#allocation2 + $0x50] sm:$0xff]  ;;  %v931_v37 = vld [vmem:[#allocation2 + $0x48] sm:$0xff]  ;;  %v933_v47 = vld [vmem:[#allocation2 + $0x20] sm:$0xff] }
 0x28d   : > { %v930_v38 = vld [vmem:[#allocation2 + $0x8] sm:$0xff]  ;;  %v932_v48 = vld [vmem:[#allocation2 + $0x40] sm:$0xff]  ;;  %v935_v57 = vld [vmem:[#allocation2 + $0x38] sm:$0xff] }
 0x28e   : > { %v934_v58 = vld [vmem:[#allocation2 + $0x10] sm:$0xff] }
 0x28f   : > { %967 = vperm.xlu1 %1547, %v913_v62   ;;  %962 = vperm.xlu0 %1546, %v912_v63  }
 0x293   : > { %977 = vperm.xlu1 %1547, %v915_v0   ;;  %972 = vperm.xlu0 %1546, %v914_v1  }
 0x297   : > { %987 = vperm.xlu1 %1547, %v917_v2   ;;  %982 = vperm.xlu0 %1546, %v916_v3   ;;  %v937_v3 = vld [vmem:[#allocation2 + $0x70] sm:$0xff] }
 0x29b   : > { %997 = vperm.xlu1 %1547, %v919_v4   ;;  %992 = vperm.xlu0 %1546, %v918_v5   ;;  %v936_v4 = vld [vmem:[#allocation2 + $0x60] sm:$0xff] }
 0x29f   : > { %1007 = vperm.xlu1 %1547, %v921_v6   ;;  %1002 = vperm.xlu0 %1546, %v920_v7  }
 0x2a3   : > { %1017 = vperm.xlu1 %1547, %v923_v8   ;;  %1012 = vperm.xlu0 %1546, %v922_v9  }
 0x302   : > { %v953_v12 = vpop.permute.xlu1 %952  ;;  %v943_v14 = vpop.permute.xlu0 %942 }
 0x303   : > { %v1022_v15 = vmul.f32 %v953_v12, %v926_v10  ;;  %v1020_v16 = vmul.f32 %v943_v14, %v924_v11  ;;  %v939_v14 = vld [vmem:[#allocation2 + $0x28] sm:$0xff] }
 0x305   : > { %vm1038_vm0 = vcmp.ge.f32.partialorder %v1022_v15, 0.0  ;;  %v1055_v19 = vmul.f32 %v2029_v13, %v1022_v15  ;;  %vm1036_vm1 = vcmp.ge.f32.partialorder %v1020_v16, 0.0  ;;  %v1053_v20 = vmul.f32 %v2029_v13, %v1020_v16 }
 0x306   : > { %v958_v21 = vpop.permute.xlu1 %957  ;;  %v948_v22 = vpop.permute.xlu0 %947 }
 0x307   : > { %v1071_v23 = vsel %vm1038_vm0, %v1022_v15, %v1055_v19  ;;  %v1069_v24 = vsel %vm1036_vm1, %v1020_v16, %v1053_v20  ;;  %v1023_v25 = vmul.f32 %v958_v21, %v927_v17  ;;  %v1021_v26 = vmul.f32 %v948_v22, %v925_v18  ;;  %v938_v15 = vld [vmem:[#allocation2 + $0x78] sm:$0xff] }
 0x308   : > { %1087 = vst [vmem:[%s1993_s8 + $0x10] sm:$0xff] %v1071_v23  ;;  %1085 = vst [vmem:[%s1993_s8] sm:$0xff] %v1069_v24 }
 0x309   : > { %vm1039_vm2 = vcmp.ge.f32.partialorder %v1023_v25, 0.0  ;;  %v1056_v29 = vmul.f32 %v2029_v13, %v1023_v25  ;;  %vm1037_vm3 = vcmp.ge.f32.partialorder %v1021_v26, 0.0  ;;  %v1054_v30 = vmul.f32 %v2029_v13, %v1021_v26 }
 0x30a   : > { %v968_v31 = vpop.permute.xlu1 %967  ;;  %v963_v32 = vpop.permute.xlu0 %962 }
 0x30b   : > { %v1072_v33 = vsel %vm1039_vm2, %v1023_v25, %v1056_v29  ;;  %v1070_v34 = vsel %vm1037_vm3, %v1021_v26, %v1054_v30  ;;  %v1025_v35 = vmul.f32 %v968_v31, %v929_v27  ;;  %v1024_v36 = vmul.f32 %v963_v32, %v928_v28 }
 0x30c   : > { %1088 = vst [vmem:[%s1993_s8 + $0x18] sm:$0xff] %v1072_v33  ;;  %1086 = vst [vmem:[%s1993_s8 + $0x8] sm:$0xff] %v1070_v34 }
 0x30d   : > { %vm1041_vm4 = vcmp.ge.f32.partialorder %v1025_v35, 0.0  ;;  %v1058_v39 = vmul.f32 %v2029_v13, %v1025_v35  ;;  %vm1040_vm5 = vcmp.ge.f32.partialorder %v1024_v36, 0.0  ;;  %v1057_v40 = vmul.f32 %v2029_v13, %v1024_v36 }
 0x30e   : > { %v978_v41 = vpop.permute.xlu1 %977  ;;  %v973_v42 = vpop.permute.xlu0 %972 }
 0x30f   : > { %v1074_v43 = vsel %vm1041_vm4, %v1025_v35, %v1058_v39  ;;  %v1073_v44 = vsel %vm1040_vm5, %v1024_v36, %v1057_v40  ;;  %v1027_v45 = vmul.f32 %v978_v41, %v931_v37  ;;  %v1026_v46 = vmul.f32 %v973_v42, %v930_v38 }
 0x310   : > { %1090 = vst [vmem:[%s1993_s8 + $0x28] sm:$0xff] %v1074_v43  ;;  %1089 = vst [vmem:[%s1993_s8 + $0x20] sm:$0xff] %v1073_v44 }
 0x311   : > { %vm1043_vm6 = vcmp.ge.f32.partialorder %v1027_v45, 0.0  ;;  %v1060_v49 = vmul.f32 %v2029_v13, %v1027_v45  ;;  %vm1042_vm7 = vcmp.ge.f32.partialorder %v1026_v46, 0.0  ;;  %v1059_v50 = vmul.f32 %v2029_v13, %v1026_v46 }
 0x312   : > { %v988_v51 = vpop.permute.xlu1 %987  ;;  %v983_v52 = vpop.permute.xlu0 %982 }
 0x313   : > { %v1076_v53 = vsel %vm1043_vm6, %v1027_v45, %v1060_v49  ;;  %v1075_v54 = vsel %vm1042_vm7, %v1026_v46, %v1059_v50  ;;  %v1029_v55 = vmul.f32 %v988_v51, %v933_v47  ;;  %v1028_v56 = vmul.f32 %v983_v52, %v932_v48 }
 0x314   : > { %1092 = vst [vmem:[%s1993_s8 + $0x38] sm:$0xff] %v1076_v53  ;;  %1091 = vst [vmem:[%s1993_s8 + $0x30] sm:$0xff] %v1075_v54 }
 0x315   : > { %vm1045_vm8 = vcmp.ge.f32.partialorder %v1029_v55, 0.0  ;;  %v1062_v59 = vmul.f32 %v2029_v13, %v1029_v55  ;;  %vm1044_vm9 = vcmp.ge.f32.partialorder %v1028_v56, 0.0  ;;  %v1061_v60 = vmul.f32 %v2029_v13, %v1028_v56 }
 0x316   : > { %v998_v61 = vpop.permute.xlu1 %997  ;;  %v993_v62 = vpop.permute.xlu0 %992 }
 0x317   : > { %v1078_v63 = vsel %vm1045_vm8, %v1029_v55, %v1062_v59  ;;  %v1077_v0 = vsel %vm1044_vm9, %v1028_v56, %v1061_v60  ;;  %v1031_v1 = vmul.f32 %v998_v61, %v935_v57  ;;  %v1030_v2 = vmul.f32 %v993_v62, %v934_v58 }
 0x318   : > { %1094 = vst [vmem:[%s1993_s8 + $0x48] sm:$0xff] %v1078_v63  ;;  %1093 = vst [vmem:[%s1993_s8 + $0x40] sm:$0xff] %v1077_v0 }
 0x319   : > { %vm1047_vm10 = vcmp.ge.f32.partialorder %v1031_v1, 0.0  ;;  %v1064_v5 = vmul.f32 %v2029_v13, %v1031_v1  ;;  %vm1046_vm11 = vcmp.ge.f32.partialorder %v1030_v2, 0.0  ;;  %v1063_v6 = vmul.f32 %v2029_v13, %v1030_v2 }
 0x31a   : > { %v1008_v7 = vpop.permute.xlu1 %1007  ;;  %v1003_v8 = vpop.permute.xlu0 %1002 }
 0x31b   : > { %v1080_v9 = vsel %vm1047_vm10, %v1031_v1, %v1064_v5  ;;  %v1079_v10 = vsel %vm1046_vm11, %v1030_v2, %v1063_v6  ;;  %v1033_v11 = vmul.f32 %v1008_v7, %v937_v3  ;;  %v1032_v12 = vmul.f32 %v1003_v8, %v936_v4 }
 0x31c   : > { %1096 = vst [vmem:[%s1993_s8 + $0x58] sm:$0xff] %v1080_v9  ;;  %1095 = vst [vmem:[%s1993_s8 + $0x50] sm:$0xff] %v1079_v10 }
 0x31d   : > { %vm1049_vm12 = vcmp.ge.f32.partialorder %v1033_v11, 0.0  ;;  %v1066_v16 = vmul.f32 %v2029_v13, %v1033_v11  ;;  %vm1048_vm13 = vcmp.ge.f32.partialorder %v1032_v12, 0.0  ;;  %v1065_v17 = vmul.f32 %v2029_v13, %v1032_v12 }
 0x31e   : > { %v1018_v18 = vpop.permute.xlu1 %1017  ;;  %v1013_v19 = vpop.permute.xlu0 %1012 }
 0x31f   : > { %v1082_v20 = vsel %vm1049_vm12, %v1033_v11, %v1066_v16  ;;  %v1081_v21 = vsel %vm1048_vm13, %v1032_v12, %v1065_v17  ;;  %v1035_v22 = vmul.f32 %v1018_v18, %v939_v14  ;;  %v1034_v23 = vmul.f32 %v1013_v19, %v938_v15 }
 0x320   : > { %1098 = vst [vmem:[%s1993_s8 + $0x68] sm:$0xff] %v1082_v20  ;;  %1097 = vst [vmem:[%s1993_s8 + $0x60] sm:$0xff] %v1081_v21 }
 0x321   : > { %vm1051_vm14 = vcmp.ge.f32.partialorder %v1035_v22, 0.0  ;;  %v1068_v24 = vmul.f32 %v2029_v13, %v1035_v22  ;;  %vm1050_vm15 = vcmp.ge.f32.partialorder %v1034_v23, 0.0  ;;  %v1067_v25 = vmul.f32 %v2029_v13, %v1034_v23 }
 0x323   : > { %v1084_v26 = vsel %vm1051_vm14, %v1035_v22, %v1068_v24  ;;  %v1083_v27 = vsel %vm1050_vm15, %v1034_v23, %v1067_v25 }
 0x324   : > { %1100 = vst [vmem:[%s1993_s8 + $0x78] sm:$0xff] %v1084_v26  ;;  %1099 = vst [vmem:[%s1993_s8 + $0x70] sm:$0xff] %v1083_v27 }
 0x325 PF: > { %s2186_s20 = sld [smem:[#allocation22_spill]]  ;;  %s1293_s5 = sshll.u32 %s1728_s28, 11 }
 0x326   : > { %s2187_s15 = sld [smem:[#allocation24_spill]]  ;;  %s1115_s7 = sshll.u32 %s1993_s8, 4  ;;  %s2070_s7 = int_to_ptr.vmem [resolvable:$true] %s1115_s7 }
 0x327   : > { %s2074_s27 = scalar_lea.sflag [#allocation7], %s412_s26  ;;  %s1600_s17 = scalar_lea.vmem %s2070_s7, 2048 }
 0x328   : > { %p1601_p4 = scmp.ne.s32.totalorder %s2070_s7, %s1600_s17  ;;  %s1750_s28 = smov [#allocation10]  }
 0x329   : > { %s1604_s18 = sshll.u32 %s1750_s28, 4  ;;  %s1605_s18 = int_to_ptr.vmem [resolvable:$false] %s1604_s18 }
 0x32a   : > { %s1606_s14 = scalar_lea.vmem %s1605_s18, 4096  ;;  %p1607_p12 = scmp.lt.s32.totalorder %s2070_s7, %s1605_s18 }
 0x32b   : > { %p2188_p6 = scmp.ne.s32.totalorder %s2186_s20, 0  ;;  %p1608_p5 = scmp.lt.s32.totalorder %s1606_s14, %s1600_s17 }
 0x32c   : > { %s2067_s12 = scalar_lea.hbm %s2187_s15, %s1293_s5 }
 0x32d   : > { %p1602_p3 = pnand %p1601_p4, %p2188_p6  ;;  %p1609_p9 = por %p1608_p5, %p1607_p12 }
 0x32f   : > { %p1603_p7 = pneg %p1602_p3 }
 0x331   : > { %p1610_p11 = pnand %p1609_p9, %p1603_p7 }
 0x333   : > { %1613 = shalt.err (!%p1610_p11)
}
 0x334   : > { %s1614_s26 = scalar_lea.hbm %s2067_s12, 2048  ;;  %s1618_s10 = scalar_lea.hbm %s2187_s15, 4096 }
 0x335   : > { %p1615_p13 = scmp.ne.s32.totalorder %s2067_s12, %s1614_s26  ;;  %p1619_p8 = scmp.lt.s32.totalorder %s2067_s12, %s2187_s15 }
 0x336   : > { %p1620_p2 = scmp.lt.s32.totalorder %s1618_s10, %s1614_s26 }
 0x337   : > { %p1616_p0 = pnand %p1615_p13, %p2188_p6 }
 0x338   : > { %p1621_p10 = por %p1620_p2, %p1619_p8 }
 0x339   : > { %p1617_p1 = pneg %p1616_p0 }
 0x33b   : > { %p1622_p4 = pnand %p1621_p10, %p1617_p1 }
 0x33d   : > { %1625 = shalt.err (!%p1622_p4)
}
 0x33e   : > { %s1751_s19 = smov 128   ;;  %s1752_s9 = smov 8  }
 0x33f   : > { %1396 = dma.vmem_to_hbm [thread:$0]  (%p2188_p6), %s2070_s7, 2048, %s2067_s12, %s2074_s27, %s1751_s19, %s1751_s19, %s1752_s9  }
 0x340 PF: > { %s2189_s5 = sld [smem:[#allocation14_spill]]  ;;  %p1408_p3 = scmp.ge.s32.totalorder %s1740_s6, 2 }
 0x341   : > { %s2190_s22 = sld [smem:[#allocation23_spill]] }
 0x346   : > { %s1130_s13 = sand.u32 1, %s2189_s5  }
 0x347   : > { %p2191_p7 = scmp.ne.s32.totalorder %s2190_s22, 0  ;;  %s1131_s17 = scalar_lea.sflag [#allocation7], %s1130_s13 }
 0x349   : > { %p1403_p12 = pnand %p1408_p3, %p2191_p7 }
 0x34b   : > { %p1404_p5 = pneg %p1403_p12 }
 0x34d   : > { %1687 = dma.done.wait (%p1404_p5), %s1131_s17, 2048  }
 0x34e   : > { %1689 = vsyncadd (%p1404_p5), %s1131_s17, 4294965248  ;;  %s23_s6 = sadd.s32 1, %s1740_s6   ;;  %s2193_s12 = sld [smem:[#allocation15_spill]] }
 0x34f   : > { %p2102_p9 = scmp.ge.s32.totalorder %s23_s6, 6   ;;  %s2194_s22 = sld [smem:[#allocation21_spill]] }
 0x350   : > { %s2195_s7 = sld [smem:[#allocation19_spill]]  ;;  %s2200_s20 = smov %s1696_s21 }
 0x351   : > { %s2196_s27 = sld [smem:[#allocation20_spill]]  ;;  %s2202_s23 = smov %s1708_s24 }
 0x352   : > { %s2197_s18 = sld [smem:[#allocation17_spill]]  ;;  %s2203_s24 = smov %s1712_s25 }
 0x353   : > { %s2198_s14 = sld [smem:[#allocation18_spill]]  ;;  %s2205_s26 = smov %s1720_s4 }
 0x354   : > { %s2201_s21 = smov %s2193_s12  ;;  %s2208_s28 = smov %s1736_s30 }
 0x355   :  { %22 = sbr.rel (!%p2102_p9) target bundleno = 14 (0xe), region = 149 }
 0x356   : > { %s2204_s25 = smov %s2195_s7 }
 0x357   : > { %s2206_s4 = smov %s2196_s27  ;;  %s2207_s27 = smov %s1732_s29 }
 0x358   : > { %s2209_s29 = smov %s2197_s18 }
 0x359   : > { %s2210_s30 = smov %s2198_s14 }
 0x35a   :  { %1136 = vsyncpa [#allocation6], 1 }
 0x35b   :  { %1138 = vsyncpa [#allocation6 + $0x1], 1 }
 0x35c   :  { %1139 = vsyncpa [#allocation9], 1 }
 0x35d   :  { %1140 = vsyncpa [#allocation7], 1 }
 0x35e   :  { %1142 = vsyncpa [#allocation7 + $0x1], 1 }

</bundles_post_ra>
